<compile_context>
chip_gen: v6e
topology: v6e:2x2x1
jax: 0.10.0
libtpu: 0.0.40
codegen_flags: <defaults>
</compile_context>

<pallas_src>
import functools
import math

import jax
import jax.numpy as jnp
from jax.experimental import pallas as pl
from jax.experimental.pallas import tpu as pltpu


# ------------------------------ Pallas kernels ------------------------------

def _noisy_linear_train_kernel(x_ref, wmu_ref, wsig_ref, eps_in_ref,
                               eps_out_ref, bias_ref, o_ref,
                               acc_mu_ref, acc_sig_ref, *, tk, x_resident):
    k = pl.program_id(1)

    @pl.when(k == 0)
    def _():
        acc_mu_ref[...] = jnp.zeros_like(acc_mu_ref)
        acc_sig_ref[...] = jnp.zeros_like(acc_sig_ref)

    start = pl.multiple_of(k * tk, 128)
    if x_resident:
        x = x_ref[:, pl.ds(start, tk)]            # (B, tk) slice of resident x
    else:
        x = x_ref[...]                            # (B, tk) streamed tile
    e_in = eps_in_ref[:, pl.ds(start, tk)]        # eps_in is always resident

    w_dtype = wmu_ref.dtype                       # bf16 (default) or f32
    xn = x * e_in                                 # f32 VPU (v5e-safe)

    # Mean path and sigma path, both native (K, N) RHS, f32 MXU accumulation.
    # TODO(synk): for bit-exact parity with a true f32 GEMM pass
    # precision=jax.lax.Precision.HIGHEST when streaming f32 weights.
    acc_mu_ref[...] += jnp.dot(x.astype(w_dtype), wmu_ref[...],
                               preferred_element_type=jnp.float32)
    acc_sig_ref[...] += jnp.dot(xn.astype(w_dtype), wsig_ref[...],
                                preferred_element_type=jnp.float32)

    @pl.when(k == pl.num_programs(1) - 1)
    def _():
        out = acc_mu_ref[...] + eps_out_ref[...] * acc_sig_ref[...] + bias_ref[...]
        o_ref[...] = out.astype(o_ref.dtype)


def _noisy_linear_eval_kernel(x_ref, wmu_ref, bias_ref, o_ref, acc_ref,
                              *, tk, x_resident):
    k = pl.program_id(1)

    @pl.when(k == 0)
    def _():
        acc_ref[...] = jnp.zeros_like(acc_ref)

    start = pl.multiple_of(k * tk, 128)
    if x_resident:
        x = x_ref[:, pl.ds(start, tk)]
    else:
        x = x_ref[...]

    acc_ref[...] += jnp.dot(x.astype(wmu_ref.dtype), wmu_ref[...],
                            preferred_element_type=jnp.float32)

    @pl.when(k == pl.num_programs(1) - 1)
    def _():
        o_ref[...] = (acc_ref[...] + bias_ref[...]).astype(o_ref.dtype)


# ------------------------------ helpers / prep ------------------------------

def _round_up(n, m):
    return ((n + m - 1) // m) * m


def _pick_tiling(dim, t_max):
    """Return (padded_dim, tile) with tile a multiple of 128 that divides
    padded_dim and wastes < 128 padded columns per tile (no zero-block streaming)."""
    dim_pad = _round_up(dim, 128)
    if dim_pad <= t_max:
        return dim_pad, dim_pad
    n_tiles = -(-dim_pad // t_max)
    tile = _round_up(-(-dim_pad // n_tiles), 128)
    return n_tiles * tile, tile


# If the whole padded activation matrix fits in this budget, keep it VMEM
# resident (single DMA) instead of re-streaming it once per N tile.
_X_RESIDENT_BYTES = 4 * 1024 * 1024


def prepare_noisy_linear(params, *, weight_dtype=jnp.bfloat16,
                         tk_max=2048, tn_max=512):
    """One-time parameter preparation.

    Transposes + pads the two weight matrices to a persistent (I_pad, O_pad)
    = (K, N) MXU-native layout (optionally down-cast to bf16 for streaming),
    pre-combines the effective bias, and pads the factored-noise row vectors.
    Do this once per parameter/noise update, NOT per forward call.
    """
    O, I = params["weight_mu"].shape
    I_pad, tk = _pick_tiling(I, tk_max)
    O_pad, tn = _pick_tiling(O, tn_max)

    def pad_w_t(w):   # (O, I) -> (I_pad, O_pad), persistent layout.
        return jnp.pad(w.T, ((0, I_pad - I), (0, O_pad - O))).astype(weight_dtype)

    def pad_row(v, n_pad):   # (n,) -> (1, n_pad) f32 row
        return jnp.pad(v, (0, n_pad - v.shape[0])).reshape(1, n_pad).astype(jnp.float32)

    b_eff = params["bias_mu"] + params["bias_sigma"] * params["bias_epsilon"]

    arrays = dict(
        weight_mu_t=pad_w_t(params["weight_mu"]),
        weight_sigma_t=pad_w_t(params["weight_sigma"]),
        eps_in=pad_row(params["eps_in"], I_pad),
        eps_out=pad_row(params["eps_out"], O_pad),
        bias_eff=pad_row(b_eff, O_pad),
        bias_mu=pad_row(params["bias_mu"], O_pad),
    )
    meta = dict(in_features=I, out_features=O, in_pad=I_pad, out_pad=O_pad,
                tk=tk, tn=tn)
    return dict(arrays=arrays, meta=meta)


# ------------------------------ forward wrapper ------------------------------

@functools.partial(
    jax.jit,
    static_argnames=("training", "tk", "tn", "x_resident", "out_features"))
def _noisy_linear_impl(x, arrays, *, training, tk, tn, x_resident, out_features):
    B, I = x.shape
    I_pad, O_pad = arrays["weight_mu_t"].shape
    B_pad = _round_up(B, 8)

    xp = jnp.pad(x, ((0, B_pad - B), (0, I_pad - I)))

    grid = (O_pad // tn, I_pad // tk)          # (N tiles, K tiles) — K last.

    if x_resident:
        x_spec = pl.BlockSpec((B_pad, I_pad), lambda j, k: (0, 0))  # 1 DMA total
    else:
        x_spec = pl.BlockSpec((B_pad, tk), lambda j, k: (0, k))
    w_spec = pl.BlockSpec((tk, tn), lambda j, k: (k, j))
    eps_in_spec = pl.BlockSpec((1, I_pad), lambda j, k: (0, 0))     # resident
    row_o_spec = pl.BlockSpec((1, tn), lambda j, k: (0, j))
    o_spec = pl.BlockSpec((B_pad, tn), lambda j, k: (0, j))

    out_shape = jax.ShapeDtypeStruct((B_pad, O_pad), x.dtype)
    compiler_params = pltpu.CompilerParams(
        dimension_semantics=("parallel", "arbitrary"),   # N across cores, K serial.
        vmem_limit_bytes=48 * 1024 * 1024,               # under v7x's 64 MiB physical.
    )

    if training:
        kernel = functools.partial(_noisy_linear_train_kernel,
                                   tk=tk, x_resident=x_resident)
        out = pl.pallas_call(
            kernel,
            out_shape=out_shape,
            grid_spec=pltpu.PrefetchScalarGridSpec(
                num_scalar_prefetch=0,
                grid=grid,
                in_specs=[
                    x_spec,        # x            (B_pad, I_pad or tk)
                    w_spec,        # weight_mu^T   (I_pad, O_pad)
                    w_spec,        # weight_sigma^T(I_pad, O_pad)
                    eps_in_spec,   # eps_in        (1, I_pad) resident
                    row_o_spec,    # eps_out       (1, O_pad)
                    row_o_spec,    # b_eff         (1, O_pad)
                ],
                out_specs=o_spec,
                scratch_shapes=[pltpu.VMEM((B_pad, tn), jnp.float32),
                                pltpu.VMEM((B_pad, tn), jnp.float32)],
            ),
            compiler_params=compiler_params,
        )(xp, arrays["weight_mu_t"], arrays["weight_sigma_t"],
          arrays["eps_in"], arrays["eps_out"], arrays["bias_eff"])
    else:
        kernel = functools.partial(_noisy_linear_eval_kernel,
                                   tk=tk, x_resident=x_resident)
        out = pl.pallas_call(
            kernel,
            out_shape=out_shape,
            grid_spec=pltpu.PrefetchScalarGridSpec(
                num_scalar_prefetch=0,
                grid=grid,
                in_specs=[x_spec, w_spec, row_o_spec],
                out_specs=o_spec,
                scratch_shapes=[pltpu.VMEM((B_pad, tn), jnp.float32)],
            ),
            compiler_params=compiler_params,
        )(xp, arrays["weight_mu_t"], arrays["bias_mu"])

    return out[:B, :out_features]


def noisy_linear_forward(x, prepared, training=True):
    """Forward pass of NoisyLinear using prepared (persistent-layout) params."""
    meta = prepared["meta"]
    B_pad = _round_up(x.shape[0], 8)
    x_resident = B_pad * meta["in_pad"] * 4 <= _X_RESIDENT_BYTES
    return _noisy_linear_impl(x, prepared["arrays"], training=training,
                              tk=meta["tk"], tn=meta["tn"],
                              x_resident=x_resident,
                              out_features=meta["out_features"])


# --------------------- Deterministic parameter construction ---------------------

def _scale_noise(key, size):
    # f(x) = sign(x) * sqrt(|x|), same as the PyTorch _scale_noise.
    x = jax.random.normal(key, (size,), dtype=jnp.float32)
    return jnp.sign(x) * jnp.sqrt(jnp.abs(x))


def init_noisy_linear(key, in_features, out_features, std_init=0.4):
    k_wmu, k_bmu, k_ein, k_eout = jax.random.split(key, 4)
    mu_range = 1.0 / math.sqrt(in_features)

    weight_mu = jax.random.uniform(
        k_wmu, (out_features, in_features), jnp.float32, -mu_range, mu_range)
    weight_sigma = jnp.full((out_features, in_features),
                            std_init / math.sqrt(in_features), jnp.float32)
    bias_mu = jax.random.uniform(
        k_bmu, (out_features,), jnp.float32, -mu_range, mu_range)
    bias_sigma = jnp.full((out_features,),
                          std_init / math.sqrt(out_features), jnp.float32)

    # reset_noise(): factored Gaussian noise.  The kernel consumes only the
    # factored vectors; the dense outer product is kept for the reference check
    # (it is exactly what the PyTorch buffer weight_epsilon would hold).
    eps_in = _scale_noise(k_ein, in_features)
    eps_out = _scale_noise(k_eout, out_features)
    weight_epsilon = jnp.outer(eps_out, eps_in)
    bias_epsilon = eps_out

    return dict(weight_mu=weight_mu, weight_sigma=weight_sigma,
                bias_mu=bias_mu, bias_sigma=bias_sigma,
                eps_in=eps_in, eps_out=eps_out,
                weight_epsilon=weight_epsilon, bias_epsilon=bias_epsilon)


# ------------------------------------ main ------------------------------------

if __name__ == "__main__":
    B, IN_FEATURES, OUT_FEATURES = 8, 32, 64

    key = jax.random.PRNGKey(0)
    k_param, k_x = jax.random.split(key)
    params = init_noisy_linear(k_param, IN_FEATURES, OUT_FEATURES, std_init=0.4)
    x = jax.random.normal(k_x, (B, IN_FEATURES), dtype=jnp.float32)

    # Plain-JAX reference using the dense epsilon matrix (exactly the PyTorch math).
    w_eff = params["weight_mu"] + params["weight_sigma"] * params["weight_epsilon"]
    b_eff = params["bias_mu"] + params["bias_sigma"] * params["bias_epsilon"]
    ref_train = x @ w_eff.T + b_eff
    ref_eval = x @ params["weight_mu"].T + params["bias_mu"]

    # ---- f32 weight streaming (reference-accurate path) ----
    prep_f32 = prepare_noisy_linear(params, weight_dtype=jnp.float32)
    y_train = jax.block_until_ready(noisy_linear_forward(x, prep_f32, training=True))
    y_eval = jax.block_until_ready(noisy_linear_forward(x, prep_f32, training=False))

    assert y_train.shape == (B, OUT_FEATURES)
    assert y_eval.shape == (B, OUT_FEATURES)
    assert jnp.allclose(y_train, ref_train, atol=1e-4, rtol=1e-4)
    assert jnp.allclose(y_eval, ref_eval, atol=1e-4, rtol=1e-4)

    # ---- bf16 weight streaming (bandwidth-optimized path, f32 accumulation) ----
    prep_bf16 = prepare_noisy_linear(params, weight_dtype=jnp.bfloat16)
    y_train_b = jax.block_until_ready(noisy_linear_forward(x, prep_bf16, training=True))
    y_eval_b = jax.block_until_ready(noisy_linear_forward(x, prep_bf16, training=False))

    assert y_train_b.shape == (B, OUT_FEATURES)
    assert y_eval_b.shape == (B, OUT_FEATURES)
    # bf16 weight quantization: compare at bf16-appropriate tolerance.
    assert jnp.allclose(y_train_b, ref_train, atol=5e-2, rtol=5e-2)
    assert jnp.allclose(y_eval_b, ref_eval, atol=5e-2, rtol=5e-2)

    print("KERNEL_OK")
</pallas_src>

<mosaic_0001>
module attributes {stable_mosaic.version = 11 : i64} {
  func.func @_noisy_linear_train_kernel(%arg0: i32, %arg1: i32, %arg2: memref<8x128xf32, #tpu.memory_space<vmem>>, %arg3: memref<128x128xf32, #tpu.memory_space<vmem>>, %arg4: memref<128x128xf32, #tpu.memory_space<vmem>>, %arg5: memref<1x128xf32, #tpu.memory_space<vmem>>, %arg6: memref<1x128xf32, #tpu.memory_space<vmem>>, %arg7: memref<1x128xf32, #tpu.memory_space<vmem>>, %arg8: memref<8x128xf32, #tpu.memory_space<vmem>>, %arg9: memref<8x128xf32, #tpu.memory_space<vmem>>, %arg10: memref<8x128xf32, #tpu.memory_space<vmem>>) attributes {dimension_semantics = [#tpu.dimension_semantics<parallel>, #tpu.dimension_semantics<arbitrary>], iteration_bounds = array<i64: 1, 1>, scalar_prefetch = 0 : i64, scratch_operands = 2 : i64, tpu.core_type = #tpu.core_type<tc>, window_params = [{pipeline_mode = #tpu.pipeline_mode<synchronous>, transform_indices = @transform_0, window_bounds = array<i64: 8, 128>}, {transform_indices = @transform_1, window_bounds = array<i64: 128, 128>}, {transform_indices = @transform_2, window_bounds = array<i64: 128, 128>}, {pipeline_mode = #tpu.pipeline_mode<synchronous>, transform_indices = @transform_3, window_bounds = array<i64: 1, 128>}, {transform_indices = @transform_4, window_bounds = array<i64: 1, 128>}, {transform_indices = @transform_5, window_bounds = array<i64: 1, 128>}, {transform_indices = @transform_6, window_bounds = array<i64: 8, 128>}]} {
    %c0_i32 = arith.constant 0 : i32
    %0 = arith.cmpi eq, %arg1, %c0_i32 : i32
    %1 = arith.extui %0 : i1 to i32
    %c0_i32_0 = arith.constant 0 : i32
    %2 = arith.cmpi ne, %1, %c0_i32_0 : i32
    scf.if %2 {
      %cst_17 = arith.constant 0.000000e+00 : f32
      %24 = vector.broadcast %cst_17 : f32 to vector<8x128xf32>
      %c0_18 = arith.constant 0 : index
      %c0_19 = arith.constant 0 : index
      %25 = vector.load %arg9[%c0_18, %c0_19] : memref<8x128xf32, #tpu.memory_space<vmem>>, vector<8x128xf32>
      tpu.vector_store %arg9[%c0_18, %c0_19], %24 {strides = array<i32>} : memref<8x128xf32, #tpu.memory_space<vmem>>, vector<8x128xf32>,
      %cst_20 = arith.constant 0.000000e+00 : f32
      %26 = vector.broadcast %cst_20 : f32 to vector<8x128xf32>
      %c0_21 = arith.constant 0 : index
      %c0_22 = arith.constant 0 : index
      %27 = vector.load %arg10[%c0_21, %c0_22] : memref<8x128xf32, #tpu.memory_space<vmem>>, vector<8x128xf32>
      tpu.vector_store %arg10[%c0_21, %c0_22], %26 {strides = array<i32>} : memref<8x128xf32, #tpu.memory_space<vmem>>, vector<8x128xf32>,
    } else {
    }
    %c128_i32 = arith.constant 128 : i32
    %3 = arith.muli %arg1, %c128_i32 : i32
    %4 = tpu.assume_multiple %3, 128 : i32
    %c0 = arith.constant 0 : index
    %5 = arith.index_cast %4 : i32 to index
    %6 = vector.load %arg2[%c0, %5] : memref<8x128xf32, #tpu.memory_space<vmem>>, vector<8x128xf32>
    %c0_1 = arith.constant 0 : index
    %7 = arith.index_cast %4 : i32 to index
    %8 = vector.load %arg5[%c0_1, %7] : memref<1x128xf32, #tpu.memory_space<vmem>>, vector<1x128xf32>
    %9 = vector.broadcast %8 : vector<1x128xf32> to vector<8x128xf32>
    %10 = arith.mulf %6, %9 : vector<8x128xf32>
    %c0_2 = arith.constant 0 : index
    %c0_3 = arith.constant 0 : index
    %11 = vector.load %arg9[%c0_2, %c0_3] : memref<8x128xf32, #tpu.memory_space<vmem>>, vector<8x128xf32>
    %c0_4 = arith.constant 0 : index
    %c0_5 = arith.constant 0 : index
    %12 = vector.load %arg3[%c0_4, %c0_5] : memref<128x128xf32, #tpu.memory_space<vmem>>, vector<128x128xf32>
    %cst = arith.constant dense<0.000000e+00> : vector<8x128xf32>
    %13 = tpu.matmul %6, %12, %cst {dimension_numbers = #tpu.dot_dimension_numbers<[1], [0], [0], [1], [0, 0, 1, 1], [], []>} : vector<8x128xf32>, vector<128x128xf32>, vector<8x128xf32> -> vector<8x128xf32>
    %14 = arith.addf %11, %13 : vector<8x128xf32>
    %c0_6 = arith.constant 0 : index
    %c0_7 = arith.constant 0 : index
    %15 = vector.load %arg9[%c0_6, %c0_7] : memref<8x128xf32, #tpu.memory_space<vmem>>, vector<8x128xf32>
    tpu.vector_store %arg9[%c0_6, %c0_7], %14 {strides = array<i32>} : memref<8x128xf32, #tpu.memory_space<vmem>>, vector<8x128xf32>,
    %c0_8 = arith.constant 0 : index
    %c0_9 = arith.constant 0 : index
    %16 = vector.load %arg10[%c0_8, %c0_9] : memref<8x128xf32, #tpu.memory_space<vmem>>, vector<8x128xf32>
    %c0_10 = arith.constant 0 : index
    %c0_11 = arith.constant 0 : index
    %17 = vector.load %arg4[%c0_10, %c0_11] : memref<128x128xf32, #tpu.memory_space<vmem>>, vector<128x128xf32>
    %cst_12 = arith.constant dense<0.000000e+00> : vector<8x128xf32>
    %18 = tpu.matmul %10, %17, %cst_12 {dimension_numbers = #tpu.dot_dimension_numbers<[1], [0], [0], [1], [0, 0, 1, 1], [], []>} : vector<8x128xf32>, vector<128x128xf32>, vector<8x128xf32> -> vector<8x128xf32>
    %19 = arith.addf %16, %18 : vector<8x128xf32>
    %c0_13 = arith.constant 0 : index
    %c0_14 = arith.constant 0 : index
    %20 = vector.load %arg10[%c0_13, %c0_14] : memref<8x128xf32, #tpu.memory_space<vmem>>, vector<8x128xf32>
    tpu.vector_store %arg10[%c0_13, %c0_14], %19 {strides = array<i32>} : memref<8x128xf32, #tpu.memory_space<vmem>>, vector<8x128xf32>,
    %c0_i32_15 = arith.constant 0 : i32
    %21 = arith.cmpi eq, %arg1, %c0_i32_15 : i32
    %22 = arith.extui %21 : i1 to i32
    %c0_i32_16 = arith.constant 0 : i32
    %23 = arith.cmpi ne, %22, %c0_i32_16 : i32
    scf.if %23 {
      %c0_17 = arith.constant 0 : index
      %c0_18 = arith.constant 0 : index
      %24 = vector.load %arg9[%c0_17, %c0_18] : memref<8x128xf32, #tpu.memory_space<vmem>>, vector<8x128xf32>
      %c0_19 = arith.constant 0 : index
      %c0_20 = arith.constant 0 : index
      %25 = vector.load %arg6[%c0_19, %c0_20] : memref<1x128xf32, #tpu.memory_space<vmem>>, vector<1x128xf32>
      %c0_21 = arith.constant 0 : index
      %c0_22 = arith.constant 0 : index
      %26 = vector.load %arg10[%c0_21, %c0_22] : memref<8x128xf32, #tpu.memory_space<vmem>>, vector<8x128xf32>
      %27 = vector.broadcast %25 : vector<1x128xf32> to vector<8x128xf32>
      %28 = arith.mulf %27, %26 : vector<8x128xf32>
      %29 = arith.addf %24, %28 : vector<8x128xf32>
      %c0_23 = arith.constant 0 : index
      %c0_24 = arith.constant 0 : index
      %30 = vector.load %arg7[%c0_23, %c0_24] : memref<1x128xf32, #tpu.memory_space<vmem>>, vector<1x128xf32>
      %31 = vector.broadcast %30 : vector<1x128xf32> to vector<8x128xf32>
      %32 = arith.addf %29, %31 : vector<8x128xf32>
      %c0_25 = arith.constant 0 : index
      %c0_26 = arith.constant 0 : index
      %33 = vector.load %arg8[%c0_25, %c0_26] : memref<8x128xf32, #tpu.memory_space<vmem>>, vector<8x128xf32>
      tpu.vector_store %arg8[%c0_25, %c0_26], %32 {strides = array<i32>} : memref<8x128xf32, #tpu.memory_space<vmem>>, vector<8x128xf32>,
    } else {
    }
    return
  }
  func.func @transform_0(%arg0: i32, %arg1: i32) -> (i32, i32) {
    %c0_i32 = arith.constant 0 : i32
    %c0_i32_0 = arith.constant 0 : i32
    %c0_i32_1 = arith.constant 0 : i32
    return %c0_i32, %c0_i32_0 : i32, i32
  }
  func.func @transform_1(%arg0: i32, %arg1: i32) -> (i32, i32) {
    %c0_i32 = arith.constant 0 : i32
    return %arg1, %arg0 : i32, i32
  }
  func.func @transform_2(%arg0: i32, %arg1: i32) -> (i32, i32) {
    %c0_i32 = arith.constant 0 : i32
    return %arg1, %arg0 : i32, i32
  }
  func.func @transform_3(%arg0: i32, %arg1: i32) -> (i32, i32) {
    %c0_i32 = arith.constant 0 : i32
    %c0_i32_0 = arith.constant 0 : i32
    %c0_i32_1 = arith.constant 0 : i32
    return %c0_i32, %c0_i32_0 : i32, i32
  }
  func.func @transform_4(%arg0: i32, %arg1: i32) -> (i32, i32) {
    %c0_i32 = arith.constant 0 : i32
    %c0_i32_0 = arith.constant 0 : i32
    return %c0_i32, %arg0 : i32, i32
  }
  func.func @transform_5(%arg0: i32, %arg1: i32) -> (i32, i32) {
    %c0_i32 = arith.constant 0 : i32
    %c0_i32_0 = arith.constant 0 : i32
    return %c0_i32, %arg0 : i32, i32
  }
  func.func @transform_6(%arg0: i32, %arg1: i32) -> (i32, i32) {
    %c0_i32 = arith.constant 0 : i32
    %c0_i32_0 = arith.constant 0 : i32
    return %c0_i32, %arg0 : i32, i32
  }
}

</mosaic_0001>

<bundles_post_ra>
// kernel: _noisy_linear_impl.1
= control target key start
LH: loop header
LB: loop body
LE: loop exit
PB: predicated region body
PF: predicated region fallthrough
CT: control target
= control target key end

     0   :  { %11 = vsyncpa [#allocation5], 0  ;;  %s568_s0 = inlined_call_operand.vmem [shape: f32[8,128], index: 0, kind: input, shape index: {}]   ;;  %s569_s1 = inlined_call_operand.hbm [shape: f32[128,128], index: 1, kind: input, shape index: {}]   ;;  %s570_s2 = inlined_call_operand.hbm [shape: f32[128,128], index: 2, kind: input, shape index: {}]   ;;  %s571_s3 = inlined_call_operand.vmem [shape: f32[1,128], index: 3, kind: input, shape index: {}]   ;;  %s572_s4 = inlined_call_operand.vmem [shape: f32[1,128], index: 4, kind: input, shape index: {}]   ;;  %s573_s5 = inlined_call_operand.vmem [shape: f32[1,128], index: 5, kind: input, shape index: {}]   ;;  %s574_s6 = inlined_call_operand.hbm [shape: f32[8,128], index: 6, kind: output, shape index: {}]  }
   0x1   :  { %12 = vsyncpa [#allocation8], 0 }
   0x2   :  { %13 = vsyncpa [#allocation6], 0  ;;  %s471_s21 = smov [#allocation4]  }
   0x3   :  { %s21_s22 = sshll.u32 %s471_s21, 4  ;;  %s22_s22 = int_to_ptr.vmem [resolvable:$true] %s21_s22 }
   0x4   :  { %s413_s23 = scalar_lea.vmem %s22_s22, 2048  ;;  %p418_p1 = scmp.lt.s32.totalorder %s22_s22, %s22_s22 }
   0x5   :  { %p414_p0 = scmp.ne.s32.totalorder %s22_s22, %s413_s23  ;;  %p419_p2 = scmp.lt.s32.totalorder %s413_s23, %s413_s23 }
   0x7   :  { %p420_p3 = por %p419_p2, %p418_p1 }
   0x9   :  { %p421_p4 = pnand %p420_p3, %p414_p0 }
   0xb   :  { %424 = shalt.err (!%p421_p4)
}
   0xc   :  { %s472_s24 = smov 128   ;;  %s473_s25 = smov 8  }
   0xd   :  { %27 = dma.hbm_to_vmem [thread:$0]  %s569_s1, 2048, %s22_s22, [#allocation5], %s472_s24, %s472_s24, %s473_s25  }
   0xe   :  { %s474_s28 = smov [#allocation7]  }
   0xf   :  { %s33_s29 = sshll.u32 %s474_s28, 4  ;;  %s34_s29 = int_to_ptr.vmem [resolvable:$true] %s33_s29 }
  0x10   :  { %s433_s30 = scalar_lea.vmem %s34_s29, 2048  ;;  %p438_p6 = scmp.lt.s32.totalorder %s34_s29, %s34_s29 }
  0x11   :  { %p434_p5 = scmp.ne.s32.totalorder %s34_s29, %s433_s30  ;;  %p439_p7 = scmp.lt.s32.totalorder %s433_s30, %s433_s30 }
  0x13   :  { %p440_p8 = por %p439_p7, %p438_p6 }
  0x15   :  { %p441_p9 = pnand %p440_p8, %p434_p5 }
  0x17   :  { %444 = shalt.err (!%p441_p9)
}
  0x18   :  { %39 = dma.hbm_to_vmem [thread:$0]  %s570_s2, 2048, %s34_s29, [#allocation8], %s472_s24, %s472_s24, %s473_s25  }
  0x19   :  { %465 = dma.done.wait [#allocation5], 2048  }
  0x1a   :  { %466 = vsyncadd [#allocation5], 4294965248 }
  0x1b   :  { %467 = dma.done.wait [#allocation8], 2048  }
  0x1c   :  { %468 = vsyncadd [#allocation8], 4294965248  ;;  %v475_v0 = vmov 0.0   ;;  %vm476_vm0 = vmmov 0   ;;  %v88_v1 = vld [vmem:[#allocation4 + $0x78] sm:$0xff]  ;;  %v87_v3 = vld [vmem:[#allocation4 + $0x70] sm:$0xff] }
  0x1d   :  { %328 = vmatprep.subr.mxu0 %v475_v0  ;;  %363 = vmatprep.subr.mxu1 %v475_v0  ;;  %v177_v2 = vld [vmem:[#allocation7 + $0x78] sm:$0xff]  ;;  %v176_v4 = vld [vmem:[#allocation7 + $0x70] sm:$0xff]  ;;  %v86_v5 = vld [vmem:[#allocation4 + $0x68] sm:$0xff]  ;;  %s477_s13 = smov [#allocation9]  }
  0x1e   :  { %360 = vmatprep.mubr.msk.f32.mxu0 %vm476_vm0, %v475_v0  ;;  %395 = vmatprep.mubr.msk.f32.mxu1 %vm476_vm0, %v475_v0  ;;  %v175_v6 = vld [vmem:[#allocation7 + $0x68] sm:$0xff]  ;;  %v85_v7 = vld [vmem:[#allocation4 + $0x60] sm:$0xff]  ;;  %v84_v9 = vld [vmem:[#allocation4 + $0x58] sm:$0xff]  ;;  %s279_s14 = sshll.u32 %s477_s13, 4  ;;  %s280_s14 = int_to_ptr.vmem [resolvable:$true] %s279_s14 }
  0x1f   :  { %329 = vmatpush3.msra.mxu0 %v88_v1  ;;  %364 = vmatpush3.msra.mxu1 %v177_v2  ;;  %v174_v8 = vld [vmem:[#allocation7 + $0x60] sm:$0xff]  ;;  %v173_v10 = vld [vmem:[#allocation7 + $0x58] sm:$0xff]  ;;  %v83_v11 = vld [vmem:[#allocation4 + $0x50] sm:$0xff]  ;;  %s445_s15 = scalar_lea.vmem %s280_s14, 128  ;;  %p450_p11 = scmp.lt.s32.totalorder %s280_s14, %s280_s14 }
  0x20   :  { %330 = vmatprep.subr.mxu0 %v475_v0  ;;  %365 = vmatprep.subr.mxu1 %v475_v0  ;;  %v172_v12 = vld [vmem:[#allocation7 + $0x50] sm:$0xff]  ;;  %v82_v13 = vld [vmem:[#allocation4 + $0x48] sm:$0xff]  ;;  %v81_v15 = vld [vmem:[#allocation4 + $0x40] sm:$0xff]  ;;  %p446_p10 = scmp.ne.s32.totalorder %s280_s14, %s445_s15  ;;  %p451_p12 = scmp.lt.s32.totalorder %s445_s15, %s445_s15 }
  0x21   :  { %331 = vmatpush3.msra.mxu0 %v87_v3  ;;  %366 = vmatpush3.msra.mxu1 %v176_v4  ;;  %v171_v14 = vld [vmem:[#allocation7 + $0x48] sm:$0xff]  ;;  %v170_v16 = vld [vmem:[#allocation7 + $0x40] sm:$0xff]  ;;  %v80_v17 = vld [vmem:[#allocation4 + $0x38] sm:$0xff] }
  0x22   :  { %332 = vmatprep.subr.mxu0 %v475_v0  ;;  %367 = vmatprep.subr.mxu1 %v475_v0  ;;  %v169_v18 = vld [vmem:[#allocation7 + $0x38] sm:$0xff]  ;;  %v79_v19 = vld [vmem:[#allocation4 + $0x30] sm:$0xff]  ;;  %v78_v21 = vld [vmem:[#allocation4 + $0x28] sm:$0xff]  ;;  %p452_p13 = por %p451_p12, %p450_p11 }
  0x23   :  { %333 = vmatpush3.msra.mxu0 %v86_v5  ;;  %368 = vmatpush3.msra.mxu1 %v175_v6  ;;  %v168_v20 = vld [vmem:[#allocation7 + $0x30] sm:$0xff]  ;;  %v167_v22 = vld [vmem:[#allocation7 + $0x28] sm:$0xff]  ;;  %v77_v23 = vld [vmem:[#allocation4 + $0x20] sm:$0xff] }
  0x24   :  { %334 = vmatprep.subr.mxu0 %v475_v0  ;;  %369 = vmatprep.subr.mxu1 %v475_v0  ;;  %v166_v24 = vld [vmem:[#allocation7 + $0x20] sm:$0xff]  ;;  %v76_v25 = vld [vmem:[#allocation4 + $0x18] sm:$0xff]  ;;  %v75_v27 = vld [vmem:[#allocation4 + $0x10] sm:$0xff]  ;;  %p453_p0 = pnand %p452_p13, %p446_p10 }
  0x25   :  { %335 = vmatpush3.msra.mxu0 %v85_v7  ;;  %370 = vmatpush3.msra.mxu1 %v174_v8  ;;  %v165_v26 = vld [vmem:[#allocation7 + $0x18] sm:$0xff]  ;;  %v164_v28 = vld [vmem:[#allocation7 + $0x10] sm:$0xff]  ;;  %v62_v29 = vld [vmem:[%s568_s0] sm:$0xff] }
  0x26   :  { %336 = vmatprep.subr.mxu0 %v475_v0  ;;  %371 = vmatprep.subr.mxu1 %v475_v0  ;;  %v291_v30 = vld [vmem:[%s571_s3] ss:$0 sm:$0xff]  ;;  %v74_v31 = vld [vmem:[#allocation4 + $0x8] sm:$0xff] }
  0x27   :  { %337 = vmatpush3.msra.mxu0 %v84_v9  ;;  %372 = vmatpush3.msra.mxu1 %v173_v10  ;;  %v163_v32 = vld [vmem:[#allocation7 + $0x8] sm:$0xff]  ;;  %v73_v33 = vld [vmem:[#allocation4] sm:$0xff]  ;;  %v71_v35 = vmul.f32 %v291_v30, %v62_v29 }
  0x28   :  { %338 = vmatprep.subr.mxu0 %v475_v0  ;;  %373 = vmatprep.subr.mxu1 %v475_v0  ;;  %v162_v34 = vld [vmem:[#allocation7] sm:$0xff] }
  0x29   :  { %339 = vmatpush3.msra.mxu0 %v83_v11  ;;  %374 = vmatpush3.msra.mxu1 %v172_v12  ;;  %v292_v36 = vld [vmem:[%s572_s4] ss:$0 sm:$0xff] }
  0x2a   :  { %340 = vmatprep.subr.mxu0 %v475_v0  ;;  %375 = vmatprep.subr.mxu1 %v475_v0  ;;  %v293_v42 = vld [vmem:[%s573_s5] ss:$0 sm:$0xff] }
  0x2b   :  { %341 = vmatpush3.msra.mxu0 %v82_v13  ;;  %376 = vmatpush3.msra.mxu1 %v171_v14 }
  0x2c   :  { %342 = vmatprep.subr.mxu0 %v475_v0  ;;  %377 = vmatprep.subr.mxu1 %v475_v0 }
  0x2d   :  { %343 = vmatpush3.msra.mxu0 %v81_v15  ;;  %378 = vmatpush3.msra.mxu1 %v170_v16 }
  0x2e   :  { %344 = vmatprep.subr.mxu0 %v475_v0  ;;  %379 = vmatprep.subr.mxu1 %v475_v0 }
  0x2f   :  { %345 = vmatpush3.msra.mxu0 %v80_v17  ;;  %380 = vmatpush3.msra.mxu1 %v169_v18 }
  0x30   :  { %346 = vmatprep.subr.mxu0 %v475_v0  ;;  %381 = vmatprep.subr.mxu1 %v475_v0 }
  0x31   :  { %347 = vmatpush3.msra.mxu0 %v79_v19  ;;  %382 = vmatpush3.msra.mxu1 %v168_v20 }
  0x32   :  { %348 = vmatprep.subr.mxu0 %v475_v0  ;;  %383 = vmatprep.subr.mxu1 %v475_v0 }
  0x33   :  { %349 = vmatpush3.msra.mxu0 %v78_v21  ;;  %384 = vmatpush3.msra.mxu1 %v167_v22 }
  0x34   :  { %350 = vmatprep.subr.mxu0 %v475_v0  ;;  %385 = vmatprep.subr.mxu1 %v475_v0 }
  0x35   :  { %351 = vmatpush3.msra.mxu0 %v77_v23  ;;  %386 = vmatpush3.msra.mxu1 %v166_v24 }
  0x36   :  { %352 = vmatprep.subr.mxu0 %v475_v0  ;;  %387 = vmatprep.subr.mxu1 %v475_v0 }
  0x37   :  { %353 = vmatpush3.msra.mxu0 %v76_v25  ;;  %388 = vmatpush3.msra.mxu1 %v165_v26 }
  0x38   :  { %354 = vmatprep.subr.mxu0 %v475_v0  ;;  %389 = vmatprep.subr.mxu1 %v475_v0 }
  0x39   :  { %355 = vmatpush3.msra.mxu0 %v75_v27  ;;  %390 = vmatpush3.msra.mxu1 %v164_v28 }
  0x3a   :  { %356 = vmatprep.subr.mxu0 %v475_v0  ;;  %391 = vmatprep.subr.mxu1 %v475_v0 }
  0x3b   :  { %357 = vmatpush3.msra.mxu0 %v74_v31  ;;  %392 = vmatpush3.msra.mxu1 %v163_v32 }
  0x3c   :  { %358 = vmatprep.subr.mxu0 %v475_v0  ;;  %393 = vmatprep.subr.mxu1 %v475_v0 }
  0x3d   :  { %359 = vmatpush3.msra.mxu0 %v73_v33  ;;  %394 = vmatpush3.msra.mxu1 %v162_v34 }
  0x3e   :  { %361 = vmatmul.mubr.f32.vlgmr.msra.gmra.mxu0 %v62_v29  ;;  %396 = vmatmul.mubr.f32.vlgmr.msra.gmra.mxu1 %v71_v35 }
  0xfe   :  { %v155_v37 = vpop.f32.mrf.mxu0  ;;  %v244_v38 = vpop.f32.mrf.mxu1 }
  0xff   :  { %v262_v39 = vmul.f32 %v292_v36, %v244_v38 }
 0x100   :  { %v362_v40 = vpop.f32.mrf.mxu0  ;;  %v397_v41 = vpop.f32.mrf.mxu1 }
 0x101   :  { %v263_v43 = vadd.f32 %v262_v39, %v155_v37 }
 0x103   :  { %v271_v44 = vadd.f32 %v293_v42, %v263_v43 }
 0x105   :  { %272 = vst [vmem:[#allocation9] sm:$0xff] %v271_v44 }
 0x106   :  { %456 = shalt.err (!%p453_p0)
}
 0x107   :  { %282 = dma.vmem_to_hbm [thread:$0]  %s280_s14, 128, %s574_s6, [#allocation6]  }
 0x108   :  { %469 = dma.done.wait [#allocation6], 128  }
 0x109   :  { %470 = vsyncadd [#allocation6], 4294967168 }
 0x10a   :  { %286 = vsyncpa [#allocation5], 1 }
 0x10b   :  { %287 = vsyncpa [#allocation8], 1 }
 0x10c   :  { %288 = vsyncpa [#allocation6], 1 }

</bundles_post_ra>
